<compile_context>
chip_gen: v5e
topology: v5e:2x2
jax: 0.10.0
libtpu: 0.0.40
codegen_flags: <defaults>
</compile_context>

<pallas_src>
import functools
import math

import jax
import jax.numpy as jnp
from jax.experimental import pallas as pl
from jax.experimental.pallas import tpu as pltpu


# ---------------------------------------------------------------------------
# Kernels
# ---------------------------------------------------------------------------
def _cbam_fused_kernel(x_ref, mt_ref, o_ref, *, inv_hw):
    """One grid step = `bb` full images: pool -> conv -> sigmoid -> scale."""
    x = x_ref[...]                                             # (bb, C, HW)
    s_sum = jnp.sum(x.astype(jnp.float32), axis=-1)            # avg pool (f32 acc)
    s_max = jnp.max(x, axis=-1).astype(jnp.float32)            # max pool (input dtype)
    # conv1d(avg) + conv1d(max) == conv1d(avg + max): conv is linear, no bias.
    s = s_sum * inv_hw + s_max                                  # (bb, C) f32
    conv = jnp.dot(s, mt_ref[...], preferred_element_type=jnp.float32)
    v = jax.nn.sigmoid(conv)                                    # (bb, C) f32
    o_ref[...] = (x * v[:, :, None].astype(x.dtype)).astype(o_ref.dtype)


def _pool_kernel(x_ref, s_ref, acc_sum, acc_max, *, true_hw, thw, need_mask):
    """Two-phase path, phase 1: avg+max pool accumulated over HW tiles."""
    t = pl.program_id(1)

    @pl.when(t == 0)
    def _init():
        acc_sum[...] = jnp.zeros(acc_sum.shape, jnp.float32)
        acc_max[...] = jnp.full(acc_max.shape, -jnp.inf, jnp.float32)

    xf = x_ref[...].astype(jnp.float32)                         # (1, C, thw)
    if need_mask:
        lane = jax.lax.broadcasted_iota(jnp.int32, xf.shape, 2) + t * thw
        valid = lane < true_hw
        xs = jnp.where(valid, xf, 0.0)
        xm = jnp.where(valid, xf, -jnp.inf)
    else:
        xs = xf
        xm = xf
    acc_sum[...] += jnp.sum(xs, axis=-1, keepdims=True)
    acc_max[...] = jnp.maximum(acc_max[...], jnp.max(xm, axis=-1, keepdims=True))

    @pl.when(t == pl.num_programs(1) - 1)
    def _finalize():
        s_ref[...] = acc_sum[...] * (1.0 / true_hw) + acc_max[...]


def _scale_kernel(x_ref, v_ref, o_ref):
    """Two-phase path, phase 2: x * sigmoid(conv(avg+max)), tiled over HW."""
    o_ref[...] = (x_ref[...] * v_ref[...].astype(x_ref.dtype)).astype(o_ref.dtype)


# ---------------------------------------------------------------------------
# Host wrapper
# ---------------------------------------------------------------------------
def _vmem_budget():
    cap = 64 * 1024 * 1024                 # conservative default (v7x per-TC)
    try:
        info = pltpu.get_tpu_info()
        cap = int(getattr(info, "vmem_capacity_bytes", cap))
    except Exception:
        pass
    if cap <= 0:
        cap = 64 * 1024 * 1024
    # Keep the double-buffered working set well under physical capacity so the
    # pipeline and the compiler's internal scratch have headroom.
    budget = max(min(int(0.45 * cap), 48 << 20), 12 << 20)
    return cap, budget


def _toeplitz(conv_w, C):
    """(C, C) banded matrix MT so that (s @ MT) == conv1d_same(s)."""
    k = conv_w.shape[0]
    pad = (k - 1) // 2
    ci = jnp.arange(C)[:, None]            # input channel (rows)
    co = jnp.arange(C)[None, :]            # output channel (cols)
    tap = ci - co + pad
    valid = (tap >= 0) & (tap < k)
    return jnp.where(valid, conv_w.astype(jnp.float32)[jnp.clip(tap, 0, k - 1)], 0.0)


def cbam_channel(x_nchw, conv_w):
    """x_nchw: (B, C, H, W); conv_w: (k,) Conv1d(1, 1, k, bias=False) weights."""
    B, C, H, W = x_nchw.shape
    HW = H * W
    dtype = x_nchw.dtype
    itemsize = jnp.dtype(dtype).itemsize

    x = x_nchw.reshape(B, C, HW)           # no padding, no trailing slice
    MT = _toeplitz(conv_w, C)

    cap, budget = _vmem_budget()
    f32_temp = C * HW * 4 if itemsize < 4 else 0

    def fused_bytes(bb):
        # double-buffered (in + out) blocks + f32 cast temp + resident MT + slack
        return (4 * bb * C * HW * itemsize + bb * f32_temp
                + 2 * C * C * 4 + (1 << 20))

    # ---------------- Path A: fused single pass, batch-tiled grid ----------
    bb = None
    if fused_bytes(1) <= budget:
        divisors = [d for d in range(1, B + 1)
                    if B % d == 0 and fused_bytes(d) <= budget]
        for min_steps in (4, 2, 1):        # prefer enough steps to pipeline / megacore
            cand = [d for d in divisors if B // d >= min_steps]
            if cand:
                bb = max(cand)
                break

    if bb is not None:
        est = fused_bytes(bb)
        vmem_limit = int(min(int(0.9 * cap), max(est + (4 << 20), 32 << 20)))
        cost = pl.CostEstimate(
            flops=3 * B * C * HW + 2 * B * C * C,
            transcendentals=B * C,
            bytes_accessed=2 * B * C * HW * itemsize + C * C * 4,
        )
        out = pl.pallas_call(
            functools.partial(_cbam_fused_kernel, inv_hw=1.0 / HW),
            out_shape=jax.ShapeDtypeStruct((B, C, HW), dtype),
            grid_spec=pltpu.PrefetchScalarGridSpec(
                num_scalar_prefetch=0,
                grid=(B // bb,),
                in_specs=[
                    pl.BlockSpec((bb, C, HW), lambda g: (g, 0, 0)),  # activation
                    pl.BlockSpec((C, C), lambda g: (0, 0)),          # conv matrix
                ],
                out_specs=pl.BlockSpec((bb, C, HW), lambda g: (g, 0, 0)),
            ),
            compiler_params=pltpu.CompilerParams(
                dimension_semantics=("parallel",),
                vmem_limit_bytes=vmem_limit,
            ),
            cost_estimate=cost,
        )(x, MT)
        return out.reshape(B, C, H, W)

    # ------------- Path B: two-phase, HW-tiled (huge C*HW slabs) -----------
    per_lane = C * max(2 * itemsize + 8, 4 * itemsize)
    thw = (int(0.6 * budget) // per_lane) // 128 * 128
    thw = max(128, thw)
    if thw >= HW:
        thw, n_hw, need_mask = HW, 1, False
    else:
        n_hw = -(-HW // thw)
        need_mask = (HW % thw) != 0
    est = max(2 * C * thw * itemsize + 2 * C * thw * 4,
              4 * C * thw * itemsize) + (2 << 20)
    vmem_limit = int(min(int(0.9 * cap), max(est + (4 << 20), 32 << 20)))

    pooled = pl.pallas_call(
        functools.partial(_pool_kernel, true_hw=HW, thw=thw, need_mask=need_mask),
        out_shape=jax.ShapeDtypeStruct((B, C, 1), jnp.float32),
        grid_spec=pltpu.PrefetchScalarGridSpec(
            num_scalar_prefetch=0,
            grid=(B, n_hw),
            in_specs=[pl.BlockSpec((1, C, thw), lambda b, t: (b, 0, t))],
            out_specs=pl.BlockSpec((1, C, 1), lambda b, t: (b, 0, 0)),
            scratch_shapes=[pltpu.VMEM((1, C, 1), jnp.float32),
                            pltpu.VMEM((1, C, 1), jnp.float32)],
        ),
        compiler_params=pltpu.CompilerParams(
            dimension_semantics=("parallel", "arbitrary"),
            vmem_limit_bytes=vmem_limit,
        ),
        cost_estimate=pl.CostEstimate(
            flops=3 * B * C * HW, transcendentals=0,
            bytes_accessed=B * C * HW * itemsize + B * C * 4),
    )(x)

    # Tiny k-tap conv + sigmoid on the pooled (B, C) vector: plain XLA.
    v = jax.nn.sigmoid(jnp.dot(pooled[:, :, 0], MT))[:, :, None]   # (B, C, 1) f32

    out = pl.pallas_call(
        _scale_kernel,
        out_shape=jax.ShapeDtypeStruct((B, C, HW), dtype),
        grid_spec=pltpu.PrefetchScalarGridSpec(
            num_scalar_prefetch=0,
            grid=(B, n_hw),
            in_specs=[pl.BlockSpec((1, C, thw), lambda b, t: (b, 0, t)),
                      pl.BlockSpec((1, C, 1), lambda b, t: (b, 0, 0))],
            out_specs=pl.BlockSpec((1, C, thw), lambda b, t: (b, 0, t)),
        ),
        compiler_params=pltpu.CompilerParams(
            dimension_semantics=("parallel", "parallel"),
            vmem_limit_bytes=vmem_limit,
        ),
        cost_estimate=pl.CostEstimate(
            flops=B * C * HW, transcendentals=0,
            bytes_accessed=2 * B * C * HW * itemsize + B * C * 4),
    )(x, v)
    return out.reshape(B, C, H, W)


# ---------------------------------------------------------------------------
# Pure-JAX reference (mirrors the PyTorch forward exactly)
# ---------------------------------------------------------------------------
def cbam_channel_reference(x, conv_w):
    B, C, H, W = x.shape
    k = conv_w.shape[0]
    pad = (k - 1) // 2
    avg = jnp.mean(x, axis=(2, 3))  # (B, C)
    mx = jnp.max(x, axis=(2, 3))    # (B, C)

    def conv1d_same(v):             # v: (B, C)
        vp = jnp.pad(v, ((0, 0), (pad, pad)))
        cols = [jnp.sum(vp[:, c:c + k] * conv_w[None, :], axis=-1) for c in range(C)]
        return jnp.stack(cols, axis=-1)

    v = jax.nn.sigmoid(conv1d_same(avg) + conv1d_same(mx))
    return x * v[:, :, None, None]


if __name__ == "__main__":
    # Small shapes consistent with the module: channels=16 gives kernel_size=3.
    B, C, H, W = 2, 16, 8, 8
    gamma, b = 2, 1
    kernel_size = int(abs((math.log(C, 2) + b) / gamma))
    kernel_size = kernel_size if kernel_size % 2 else kernel_size + 1  # -> 3

    key = jax.random.PRNGKey(0)
    kx, kw = jax.random.split(key)
    x = jax.random.normal(kx, (B, C, H, W), dtype=jnp.float32)
    # Deterministic synthetic Conv1d(1, 1, kernel_size, bias=False) weights.
    conv_w = jax.random.normal(kw, (kernel_size,), dtype=jnp.float32) * 0.5

    out = cbam_channel(x, conv_w)
    jax.block_until_ready(out)

    ref = cbam_channel_reference(x, conv_w)
    assert out.shape == x.shape
    assert out.dtype == x.dtype
    assert jnp.allclose(out, ref, atol=1e-5, rtol=1e-5), "mismatch vs reference"
    print("KERNEL_OK")
</pallas_src>

<mosaic_0001>
module attributes {stable_mosaic.version = 11 : i64} {
  func.func @_cbam_fused_kernel(%arg0: i32, %arg1: memref<1x16x64xf32, #tpu.memory_space<vmem>>, %arg2: memref<16x16xf32, #tpu.memory_space<vmem>>, %arg3: memref<1x16x64xf32, #tpu.memory_space<vmem>>) attributes {dimension_semantics = [#tpu.dimension_semantics<parallel>], iteration_bounds = array<i64: 2>, scalar_prefetch = 0 : i64, scratch_operands = 0 : i64, tpu.core_type = #tpu.core_type<tc>, window_params = [{transform_indices = @transform_0, window_bounds = array<i64: 1, 16, 64>}, {pipeline_mode = #tpu.pipeline_mode<synchronous>, transform_indices = @transform_1, window_bounds = array<i64: 16, 16>}, {transform_indices = @transform_2, window_bounds = array<i64: 1, 16, 64>}]} {
    %c0 = arith.constant 0 : index
    %c0_0 = arith.constant 0 : index
    %c0_1 = arith.constant 0 : index
    %0 = vector.load %arg1[%c0, %c0_0, %c0_1] : memref<1x16x64xf32, #tpu.memory_space<vmem>>, vector<1x16x64xf32>
    %cst = arith.constant dense<0.000000e+00> : vector<1x16xf32>
    %1 = vector.multi_reduction <add>, %0, %cst [2] : vector<1x16x64xf32> to vector<1x16xf32>
    %cst_2 = arith.constant dense<0xFF800000> : vector<1x16xf32>
    %2 = vector.multi_reduction <maximumf>, %0, %cst_2 [2] : vector<1x16x64xf32> to vector<1x16xf32>
    %cst_3 = arith.constant 1.562500e-02 : f32
    %3 = vector.broadcast %cst_3 : f32 to vector<1x16xf32>
    %4 = arith.mulf %1, %3 : vector<1x16xf32>
    %5 = arith.addf %4, %2 : vector<1x16xf32>
    %c0_4 = arith.constant 0 : index
    %c0_5 = arith.constant 0 : index
    %6 = vector.load %arg2[%c0_4, %c0_5] : memref<16x16xf32, #tpu.memory_space<vmem>>, vector<16x16xf32>
    %cst_6 = arith.constant dense<0.000000e+00> : vector<1x16xf32>
    %7 = tpu.matmul %5, %6, %cst_6 {dimension_numbers = #tpu.dot_dimension_numbers<[1], [0], [0], [1], [0, 0, 1, 1], [], []>} : vector<1x16xf32>, vector<16x16xf32>, vector<1x16xf32> -> vector<1x16xf32>
    %8 = arith.negf %7 : vector<1x16xf32>
    %9 = math.exp %8 : vector<1x16xf32>
    %cst_7 = arith.constant 1.000000e+00 : f32
    %10 = vector.broadcast %cst_7 : f32 to vector<1x16xf32>
    %11 = arith.addf %10, %9 : vector<1x16xf32>
    %12 = arith.divf %10, %11 : vector<1x16xf32>
    %13 = vector.shape_cast %12 : vector<1x16xf32> to vector<1x16x1xf32>
    %14 = vector.broadcast %13 : vector<1x16x1xf32> to vector<1x16x64xf32>
    %15 = arith.mulf %0, %14 : vector<1x16x64xf32>
    %c0_8 = arith.constant 0 : index
    %c0_9 = arith.constant 0 : index
    %c0_10 = arith.constant 0 : index
    %16 = vector.load %arg3[%c0_8, %c0_9, %c0_10] : memref<1x16x64xf32, #tpu.memory_space<vmem>>, vector<1x16x64xf32>
    tpu.vector_store %arg3[%c0_8, %c0_9, %c0_10], %15 {strides = array<i32>} : memref<1x16x64xf32, #tpu.memory_space<vmem>>, vector<1x16x64xf32>,
    return
  }
  func.func @transform_0(%arg0: i32) -> (i32, i32, i32) {
    %c0_i32 = arith.constant 0 : i32
    %c0_i32_0 = arith.constant 0 : i32
    %c0_i32_1 = arith.constant 0 : i32
    return %arg0, %c0_i32, %c0_i32_0 : i32, i32, i32
  }
  func.func @transform_1(%arg0: i32) -> (i32, i32) {
    %c0_i32 = arith.constant 0 : i32
    %c0_i32_0 = arith.constant 0 : i32
    %c0_i32_1 = arith.constant 0 : i32
    return %c0_i32, %c0_i32_0 : i32, i32
  }
  func.func @transform_2(%arg0: i32) -> (i32, i32, i32) {
    %c0_i32 = arith.constant 0 : i32
    %c0_i32_0 = arith.constant 0 : i32
    %c0_i32_1 = arith.constant 0 : i32
    return %arg0, %c0_i32, %c0_i32_0 : i32, i32, i32
  }
}

</mosaic_0001>

<bundles_post_ra>
// kernel: tpu_custom_call.1
= control target key start
LH: loop header
LB: loop body
LE: loop exit
PB: predicated region body
PF: predicated region fallthrough
CT: control target
= control target key end

     0   :  { %7 = vsyncpa [#allocation3], 0  ;;  %s768_s0 = inlined_call_operand.hbm [shape: f32[2,16,64], index: 0, kind: input, shape index: {}]   ;;  %s769_s1 = inlined_call_operand.hbm [shape: f32[16,16], index: 1, kind: input, shape index: {}]   ;;  %s770_s2 = inlined_call_operand.hbm [shape: f32[2,16,64], index: 2, kind: output, shape index: {}]  }
   0x1   :  { %9 = vsyncpa [#allocation3 + $0x1], 0 }
   0x2   :  { %10 = vsyncpa [#allocation6], 0 }
   0x3   :  { %11 = vsyncpa [#allocation4], 0 }
   0x4   :  { %13 = vsyncpa [#allocation4 + $0x1], 0  ;;  %s609_s9 = smov 0   ;;  %s611_s10 = smov 0  }
   0x5   :  { %s613_s11 = smov 0   ;;  %s615_s12 = smov 0  }
   0x6 LB: > { %s630_s13 = sadd.s32 4294967295, %s587_s12   ;;  %s369_s14 = sadd.s32 4294967294, %s587_s12   ;;  %s587_s12 = sphi %s615_s12, %s780_s12   ;;  %s583_s11 = sphi %s613_s11, %s779_s11   ;;  %s579_s10 = sphi %s611_s10, %s778_s10   ;;  %s575_s9 = sphi %s609_s9, %s777_s9  }
   0x7   : > { %p39_p0 = scmp.ne.s32.totalorder %s579_s10, %s575_s9  ;;  %p40_p1 = scmp.eq.s32.totalorder %s630_s13, 0 }
   0x8   : > { %p84_p2 = scmp.eq.s32.totalorder %s630_s13, 1  ;;  %p90_p3 = scmp.eq.s32.totalorder %s369_s14, 1 }
   0x9   : > { %p639_p4 = por %p40_p1, %p39_p0  ;;  %p370_p5 = scmp.ge.s32.totalorder %s587_s12, 1 }
   0xa   : > { %p644_p6 = por %p90_p3, %p39_p0  ;;  %p97_p7 = scmp.lt.s32.totalorder %s587_s12, 3 }
   0xb   : > { %s108_s19 = sshll.u32 %s769_s1, 4  ;;  %s589_s21 = smov [#allocation5]   ;;  %s109_s19 = int_to_ptr.hbm [resolvable:$true] %s108_s19 }
   0xc   : > { %p652_p8 = pnand %p370_p5, %p97_p7  ;;  %s110_s22 = sshll.u32 %s589_s21, 4  ;;  %s111_s22 = int_to_ptr.vmem [resolvable:$true] %s110_s22 }
   0xd   : > { %s662_s23 = sadd.s32 1, %s587_s12   ;;  %s590_s24 = smov 128  }
   0xe   : > { %p397_p9 = pneg %p652_p8  ;;  %s591_s25 = smov 8  }
   0xf   : > { %s23_s26 = ssub.s32 %s587_s12, %s662_s23  ;;  %s26_s27 = sadd.s32 1, %s583_s11 }
  0x10   : > { %p398_p10 = pnand %p397_p9, %p40_p1  ;;  %p24_p12 = scmp.eq.s32.totalorder %s23_s26, 0 }
  0x11   : > { %p33_p13 = scmp.ne.s32.totalorder %s583_s11, %s579_s10  ;;  %p34_p0 = scmp.eq.s32.totalorder %s587_s12, 0 }
  0x12   : > { %400 = dma.hbm_to_vmem [thread:$0]  (!%p398_p10), %s109_s19, 256, %s111_s22, [#allocation6], %s590_s24, %s590_s24, %s591_s25  }
  0x13   : > { %s674_s28 = scalar_select %p24_p12, %s583_s11, %s26_s27  }
  0x14   : > { %p678_p3 = por %p84_p2, %p33_p13  ;;  %p410_p5 = scmp.lt.s32.totalorder %s587_s12, 2 }
  0x15   : > { %s124_s30 = sand.u32 1, %s583_s11   ;;  %s387_s3 = sshll.u32 %s587_s12, 4 }
  0x16   : > { %p35_p7 = por %p34_p0, %p33_p13  ;;  %s373_s4 = sshll.u32 %s124_s30, 4 }
  0x17   : > { %s133_s7 = scalar_lea.hbm %s768_s0, %s387_s3  ;;  %s128_s14 = scalar_lea.vmem [#allocation2], %s373_s4 }
  0x18   : > { %s134_s8 = sshll.u32 %s133_s7, 4  ;;  %s136_s17 = sshll.u32 %s128_s14, 4  ;;  %s135_s8 = int_to_ptr.hbm [resolvable:$true] %s134_s8  ;;  %s137_s17 = int_to_ptr.vmem [resolvable:$true] %s136_s17 }
  0x19   : > { %p688_p9 = pnand %p410_p5, %p35_p7  ;;  %s125_s19 = scalar_lea.sflag [#allocation3], %s124_s30 }
  0x1a   : > { %s487_s21 = sshra.s32 %s135_s8, 4  ;;  %s494_s3 = scalar_lea.hbm %s768_s0, 32  ;;  %s488_s21 = int_to_ptr.hbm [resolvable:$true] %s487_s21 }
  0x1b   : > { %s489_s22 = scalar_lea.hbm %s488_s21, 16  ;;  %p491_p10 = pneg %p688_p9 }
  0x1c   : > { %p490_p2 = scmp.ne.s32.totalorder %s488_s21, %s489_s22  ;;  %p495_p0 = scmp.lt.s32.totalorder %s488_s21, %s768_s0 }
  0x1d   : > { %p496_p5 = scmp.lt.s32.totalorder %s494_s3, %s489_s22 }
  0x1e   : > { %p492_p12 = pnand %p491_p10, %p490_p2 }
  0x1f   : > { %p497_p7 = por %p496_p5, %p495_p0 }
  0x20   : > { %p493_p13 = pneg %p492_p12 }
  0x22   : > { %p498_p11 = pnand %p497_p7, %p493_p13 }
  0x24   : > { %501 = shalt.err (!%p498_p11)
}
  0x25   : > { %404 = dma.hbm_to_vmem [thread:$0]  (!%p688_p9), %s135_s8, 256, %s137_s17, %s125_s19, %s590_s24, %s590_s24, %s591_s25  }
  0x26   : > { %148 = sbr.rel (%p652_p8) target bundleno = 448 (0x1c0), region = 28  ;;  %s708_s30 = sand.u32 (!%p652_p8), 1, %s579_s10  }
  0x27   : > { %s377_s6 = sshll.u32 (!%p652_p8), %s708_s30, 4  ;;  %s151_s7 = scalar_lea.sflag (!%p652_p8), [#allocation3], %s708_s30 }
  0x28   : > { %s154_s14 = scalar_lea.vmem (!%p652_p8), [#allocation2], %s377_s6 }
  0x2b   : > { %562 = dma.done.wait (%p639_p4), %s151_s7, 256  }
  0x2c   : > { %564 = vsyncadd (%p639_p4), %s151_s7, 4294967040 }
  0x2d   : > { %566 = dma.done.wait (%p40_p1), [#allocation6], 256  }
  0x2e   : > { %568 = vsyncadd (%p40_p1), [#allocation6], 4294967040  ;;  %vm183_vm0 = vcmask 523264   ;;  %v181_v0 = vld [vmem:[%s154_s14] sm:$0xff]  ;;  %v724_v3 = vld [vmem:[%s154_s14 + $0x8] sm:$0xff]  ;;  %v204_v10 = vlaneseq  ;;  %vm209_vm1 = vcmask 130112  }
  0x2f   : > { %v184_v1 = vsel %vm183_vm0, %v181_v0, 0.0  ;;  %v190_v2 = vsel %vm183_vm0, %v181_v0, -inf  ;;  %v187_v4 = vsel %vm183_vm0, %v724_v3, 0.0  ;;  %v193_v5 = vsel %vm183_vm0, %v724_v3, -inf  ;;  %v201_v6 = vld [vmem:[#allocation5 + $0x8] sm:$0xff]  ;;  %v200_v7 = vld [vmem:[#allocation5] sm:$0xff] }
  0x30   : > { %185 = vadd.xlane.f32.xlu0 %v184_v1  ;;  %191 = vmax.xlane.f32.xlu1 %v190_v2  ;;  %v205_v12 = vand.u32 127, %v204_v10  ;;  %vm211_vm2 = vcmask 130048   ;;  %v255_v22 = vshrl.u32 %v204_v10, 7  ;;  %s180_s15 = scalar_lea.vmem [#allocation7], %s377_s6  ;;  %s388_s20 = sshll.u32 %s630_s13, 4 }
  0x31   : > { %228 = vmatpush.msra.mxu0 %v201_v6  ;;  %s282_s8 = scalar_lea.hbm %s770_s2, %s388_s20  ;;  %s283_s17 = sshll.u32 %s180_s15, 4  ;;  %s284_s17 = int_to_ptr.vmem [resolvable:$true] %s283_s17 }
  0x32   : > { %v207_v17 = vadd.s32 4294967288, %v205_v12  ;;  %450 = vset.pattern.permute.xlu2 %v255_v22  ;;  %v262_v23 = vadd.s32 8, %v255_v22  ;;  %s285_s18 = sshll.u32 %s282_s8, 4  ;;  %s271_s19 = scalar_lea.sflag [#allocation4], %s708_s30  ;;  %s286_s18 = int_to_ptr.hbm [resolvable:$true] %s285_s18 }
  0x33   : > { %229 = vmatpush.msra.mxu0 %v200_v7  ;;  %s531_s21 = sshra.s32 %s286_s18, 4  ;;  %s537_s27 = scalar_lea.hbm %s770_s2, 32  ;;  %s532_s21 = int_to_ptr.hbm [resolvable:$true] %s531_s21 }
  0x34   : > { %452 = vset.pattern.permute.xlu0 %v262_v23  ;;  %s533_s22 = scalar_lea.hbm %s532_s21, 16  ;;  %p538_p11 = scmp.lt.s32.totalorder %s532_s21, %s770_s2 }
  0x35   : > { %p534_p1 = scmp.ne.s32.totalorder %s532_s21, %s533_s22  ;;  %p539_p9 = scmp.lt.s32.totalorder %s537_s27, %s533_s22 }
  0x37   : > { %p535_p4 = pnand %p534_p1, %p678_p3  ;;  %p540_p2 = por %p539_p9, %p538_p11 }
  0x38   : > { %188 = vadd.xlane.f32.xlu0 %v187_v4  ;;  %194 = vmax.xlane.f32.xlu1 %v193_v5 }
  0x39   : > { %p536_p8 = pneg %p535_p4 }
  0x3b   : > { %p541_p10 = pnand %p540_p2, %p536_p8 }
  0xa3   : > { %v186_v8 = vpop.xlane.xlu0 %185  ;;  %v192_v9 = vpop.xlane.xlu1 %191 }
  0xa4   : > { %v196_v11 = vmul.f32 0.015625, %v186_v8 }
  0xa6   : > { %v198_v15 = vadd.f32 %v196_v11, %v192_v9 }
  0xa8   : > { %v206_v19 = vperm.slane %v198_v15, %v205_v12 }
  0xab   : > { %v189_v13 = vpop.xlane.xlu0 %188  ;;  %v195_v14 = vpop.xlane.xlu1 %194 }
  0xac   : > { %v197_v16 = vmul.f32 0.015625, %v189_v13 }
  0xae   : > { %v199_v18 = vadd.f32 %v197_v16, %v195_v14 }
  0xb0   : > { %v208_v20 = vperm.slane %v199_v18, %v207_v17 }
  0xb2   : > { %v210_v21 = vsel %vm209_vm1, %v208_v20, %v206_v19 }
  0xb3   : > { %380 = vmatmul.msk.f32.vlgmr.msra.gmra.mxu0 %vm211_vm2, %v210_v21 }
 0x130   : > { %v231_v24 = vpop.f32.mrf.mxu0 }
 0x131   : > { %v381_v25 = vmul.f32 -1.442695, %v231_v24 }
 0x133   : > { %453 = vpow2.f32 %v381_v25 }
 0x139   : > { %v454_v26 = vpop.eup %453 }
 0x13a   : > { %v237_v27 = vadd.f32 1.0, %v454_v26 }
 0x13c   : > { %455 = vrcp.f32 %v237_v27  ;;  %v249_v31 = vand.u32 2147483648, %v237_v27  ;;  %v247_v33 = vand.u32 2147483647, %v237_v27  ;;  %vm243_vm4 = vweird.f32 %v237_v27 }
 0x13e   : > { %v250_v35 = vor.u32 1.1754944e-38, %v249_v31  ;;  %vm248_vm6 = vcmp.eq.f32.partialorder %v247_v33, 8.507059e+37 }
 0x142   : > { %v456_v28 = vpop.eup %455 }
 0x143   : > { %v239_v29 = vmul.f32 %v456_v28, %v237_v27  ;;  %vm244_vm3 = vweird.f32 %v456_v28 }
 0x144   : > { %vm245_vm5 = vmor %vm243_vm4, %vm244_vm3 }
 0x145   : > { %v240_v30 = vsub.f32 1.0, %v239_v29 }
 0x147   : > { %v241_v32 = vmul.f32 %v456_v28, %v240_v30 }
 0x149   : > { %v242_v34 = vadd.f32 %v456_v28, %v241_v32 }
 0x14b   : > { %v246_v36 = vsel %vm245_vm5, %v456_v28, %v242_v34 }
 0x14c   : > { %v251_v37 = vsel %vm248_vm6, %v250_v35, %v246_v36 }
 0x14d   : > { %v253_v38 = vperm.slane %v251_v37, 0 }
 0x14f   : > { %258 = vperm.xlu2 %450, %v253_v38  }
 0x157   : > { %451 = vset.pattern.permute.xlu2 %v262_v23 }
 0x15f   : > { %264 = vperm.xlu2 %451, %v253_v38  }
 0x1a9   : > { %v259_v39 = vpop.permute.xlu2 %258 }
 0x1aa   : > { %v266_v40 = vmul.f32 %v259_v39, %v181_v0 }
 0x1ac   : > { %268 = vst.msk [vmem:[%s180_s15] sm:$0xff] %vm183_vm0, %v266_v40 }
 0x1b9   : > { %v265_v41 = vpop.permute.xlu2 %264 }
 0x1ba   : > { %v267_v42 = vmul.f32 %v265_v41, %v724_v3 }
 0x1bc   : > { %269 = vst.msk [vmem:[%s180_s15 + $0x8] sm:$0xff] %vm183_vm0, %v267_v42 }
 0x1bd   : > { %544 = shalt.err (!%p541_p10)
}
 0x1be   : > { %s592_s5 = smov 128   ;;  %s593_s30 = smov 8  }
 0x1bf   : > { %395 = dma.vmem_to_hbm [thread:$0]  (%p678_p3), %s284_s17, 256, %s286_s18, %s271_s19, %s592_s5, %s592_s5, %s593_s30  }
 0x1c0 PF: > { %s300_s6 = sand.u32 1, %s575_s9   ;;  %p776_p12 = scmp.ge.s32.totalorder %s587_s12, 2 }
 0x1c1   : > { %s301_s7 = scalar_lea.sflag [#allocation4], %s300_s6 }
 0x1c2   : > { %p406_p13 = pnand %p776_p12, %p644_p6 }
 0x1c4   : > { %p407_p0 = pneg %p406_p13 }
 0x1c6   : > { %570 = dma.done.wait (%p407_p0), %s301_s7, 256  }
 0x1c7   : > { %572 = vsyncadd (%p407_p0), %s301_s7, 4294967040  ;;  %p16_p5 = scmp.ge.s32.totalorder %s662_s23, 4   ;;  %s777_s9 = smov %s579_s10 }
 0x1c8   : > { %s778_s10 = smov %s583_s11  ;;  %s779_s11 = smov %s674_s28 }
 0x1c9   : > { %s780_s12 = smov %s662_s23  ;;  %18 = sbr.rel (!%p16_p5) target bundleno = 6 (0x6), region = 77 }
 0x1ce   :  { %307 = vsyncpa [#allocation3], 1 }
 0x1cf   :  { %309 = vsyncpa [#allocation3 + $0x1], 1 }
 0x1d0   :  { %310 = vsyncpa [#allocation6], 1 }
 0x1d1   :  { %311 = vsyncpa [#allocation4], 1 }
 0x1d2   :  { %313 = vsyncpa [#allocation4 + $0x1], 1 }

</bundles_post_ra>
